<compile_context>
chip_gen: v7x
topology: tpu7x:2x2x1
jax: 0.10.0
libtpu: 0.0.40
codegen_flags: <defaults>
</compile_context>

<pallas_src>
import functools

import jax
import jax.numpy as jnp
from jax.experimental import pallas as pl
from jax.experimental.pallas import tpu as pltpu

_NEG_LARGE = -1e30   # effectively -inf, keeps all arithmetic NaN-free
_LANE = 128
_SUBLANE = 8


def _round_up(x, m):
    return (x + m - 1) // m * m


def _pick_tile(padded, requested, granule):
    """Largest multiple of `granule` that divides `padded` and is <= requested."""
    t = max(granule, min(_round_up(requested, granule), padded))
    t = (t // granule) * granule
    while padded % t:
        t -= granule
    return t


def _vmem_bytes(tile_m, tile_v, d):
    """Double-buffered per-step working set in bytes (already includes 2x)."""
    return (2 * tile_m * d * 2          # x tile (bf16)
            + 2 * d * tile_v * 2        # weight tile (bf16)
            + 2 * tile_v * 4            # bias tile (f32)
            + 2 * tile_m * tile_v * 4   # output tile (f32)
            + 2 * tile_m * 4)           # running max / sum-exp scratch


def generator_kernel(x_ref, w_ref, b_ref, o_ref, m_sc, l_sc):
    phase = pl.program_id(1)   # 0: accumulate logsumexp stats, 1: write output
    j = pl.program_id(2)       # vocab-tile index

    # (tile_m, tile_v) logits tile: bf16 x bf16 -> f32 on the MXU.  Weight is
    # pre-transposed to (D, v_pad) so this is the native orientation.
    logits = jnp.dot(x_ref[...], w_ref[...],
                     preferred_element_type=jnp.float32) + b_ref[...]

    @pl.when(jnp.logical_and(phase == 0, j == 0))
    def _init():
        m_sc[...] = jnp.full_like(m_sc, _NEG_LARGE)
        l_sc[...] = jnp.zeros_like(l_sc)

    @pl.when(phase == 0)
    def _accumulate():
        m_prev = m_sc[...]
        m_new = jnp.maximum(m_prev, jnp.max(logits, axis=-1, keepdims=True))
        l_sc[...] = (l_sc[...] * jnp.exp(m_prev - m_new)
                     + jnp.sum(jnp.exp(logits - m_new), axis=-1, keepdims=True))
        m_sc[...] = m_new

    @pl.when(phase == 1)
    def _write():
        lse = m_sc[...] + jnp.log(l_sc[...])
        o_ref[...] = (logits - lse).astype(o_ref.dtype)


@functools.partial(jax.jit, static_argnames=("cfg",))
def _generator_call(x, w_t, b, cfg):
    (tile_m, tile_v, m_pad, v_pad, M, V, B, S, vmem_limit) = cfg
    D = x.shape[-1]

    x2 = x.reshape(M, D)
    if m_pad != M:
        x2 = jnp.pad(x2, ((0, m_pad - M), (0, 0)))
    x2 = x2.astype(jnp.bfloat16)   # MXU-native operands, f32 accumulation

    out = pl.pallas_call(
        generator_kernel,
        out_shape=jax.ShapeDtypeStruct((m_pad, v_pad), jnp.float32),
        grid_spec=pltpu.PrefetchScalarGridSpec(
            num_scalar_prefetch=0,
            grid=(m_pad // tile_m, 2, v_pad // tile_v),
            in_specs=[
                pl.BlockSpec((tile_m, D), lambda i, p, j: (i, 0)),   # x rows
                pl.BlockSpec((D, tile_v), lambda i, p, j: (0, j)),   # W tile
                pl.BlockSpec((1, tile_v), lambda i, p, j: (0, j)),   # bias tile
            ],
            # Phase 0 pins the output block index at (i, 0): the index never
            # changes inside the stats pass so no garbage tile is ever flushed
            # to HBM.  Phase 1 visits (i, j) and fully overwrites each tile
            # exactly once before its index changes (blocks are only written
            # back on index change / grid end).  Do NOT reorder the phase/V
            # grid axes without revisiting this invariant.
            out_specs=pl.BlockSpec((tile_m, tile_v), lambda i, p, j: (i, j * p)),
            scratch_shapes=[
                pltpu.VMEM((tile_m, 1), jnp.float32),   # running row max
                pltpu.VMEM((tile_m, 1), jnp.float32),   # running row sum-exp
            ],
        ),
        compiler_params=pltpu.CompilerParams(
            dimension_semantics=("parallel", "arbitrary", "arbitrary"),
            vmem_limit_bytes=vmem_limit,
        ),
    )(x2, w_t, b)

    if m_pad != M or v_pad != V:
        out = out[:M, :V]
    return out.reshape(B, S, V)


def prepare_generator_params(weight, bias):
    """One-time prep (outside the per-step hot path).

    weight: (V, D) f32 (PyTorch nn.Linear layout); bias: (V,) f32.
    Returns w_t: (D, v_pad) bf16 and b: (1, v_pad) f32 (padded cols get a
    -1e30 bias so they contribute nothing to the softmax normalizer).
    """
    V, D = weight.shape
    v_pad = _round_up(V, _LANE)
    w_t = jnp.pad(weight.astype(jnp.bfloat16), ((0, v_pad - V), (0, 0))).T
    b = jnp.pad(bias.astype(jnp.float32), (0, v_pad - V),
                constant_values=_NEG_LARGE).reshape(1, v_pad)
    return w_t, b


def generator_forward(x, w_t, b, vocab_size, *, tile_m=512, tile_v=2048):
    """log_softmax(x @ W.T + bias, axis=-1) with prepared params.

    x: (B, S, D) f32; (w_t, b) from prepare_generator_params; vocab_size = V.
    """
    B, S, D = x.shape
    assert w_t.shape[0] == D
    v_pad = w_t.shape[1]
    M = B * S
    m_pad = _round_up(M, _SUBLANE)

    # Generation-aware VMEM budget: ~96 MiB on v5e/v6e (128 MiB), ~48 MiB on
    # v7x (64 MiB).
    try:
        vmem_cap = int(pltpu.get_tpu_info().vmem_capacity_bytes)
    except Exception:  # pragma: no cover - conservative fallback
        vmem_cap = 64 * 1024 * 1024
    budget = (vmem_cap * 3) // 4

    # Row tile: as large as possible (W re-stream scales as 1/tile_m), but keep
    # >= 2 row tiles when rows allow so both v7x TensorCores get work.
    req_m = min(tile_m, m_pad)
    if m_pad >= 1024:
        req_m = min(req_m, m_pad // 2)
    tile_m_eff = _pick_tile(m_pad, req_m, _SUBLANE)

    # Vocab tile: wide lane-dense tiles (fewer grid steps / cross-lane
    # reductions, unmasked stores), shrunk to fit the VMEM budget.
    tile_v_eff = _pick_tile(v_pad, min(tile_v, v_pad), _LANE)
    while tile_v_eff > _LANE and _vmem_bytes(tile_m_eff, tile_v_eff, D) > budget:
        tile_v_eff = _pick_tile(v_pad, tile_v_eff - _LANE, _LANE)
    while tile_m_eff > _SUBLANE and _vmem_bytes(tile_m_eff, tile_v_eff, D) > budget:
        tile_m_eff = _pick_tile(m_pad, tile_m_eff - _SUBLANE, _SUBLANE)

    est = _vmem_bytes(tile_m_eff, tile_v_eff, D)
    vmem_limit = int(min(max(int(est * 1.25), 24 * 1024 * 1024), budget))

    cfg = (tile_m_eff, tile_v_eff, m_pad, v_pad, M, int(vocab_size), B, S,
           vmem_limit)
    return _generator_call(x, w_t, b, cfg=cfg)


def reference_forward(x, weight, bias):
    # Match the kernel's bf16 operand precision (f32 accumulation).
    xf = x.astype(jnp.bfloat16).astype(jnp.float32)
    wf = weight.astype(jnp.bfloat16).astype(jnp.float32)
    logits = jnp.einsum("bsd,vd->bsv", xf, wf) + bias
    return jax.nn.log_softmax(logits, axis=-1)


if __name__ == "__main__":
    # Small shapes consistent with the module: batch=2, seq=8, d_model=32,
    # vocab=128.
    B, S, D, V = 2, 8, 32, 128
    kx, kw, kb = jax.random.split(jax.random.PRNGKey(0), 3)
    bound = 1.0 / (D ** 0.5)
    x = jax.random.normal(kx, (B, S, D), dtype=jnp.float32)
    weight = jax.random.uniform(kw, (V, D), minval=-bound, maxval=bound,
                                dtype=jnp.float32)
    bias = jax.random.uniform(kb, (V,), minval=-bound, maxval=bound,
                              dtype=jnp.float32)

    w_t, b_p = prepare_generator_params(weight, bias)
    out = jax.block_until_ready(generator_forward(x, w_t, b_p, V))
    ref = reference_forward(x, weight, bias)
    assert out.shape == (B, S, V)
    assert jnp.allclose(out, ref, atol=2e-3, rtol=2e-3), \
        float(jnp.max(jnp.abs(out - ref)))

    # Multiple M/V tiles -> exercises the two-phase online logsumexp across
    # vocab tiles and multiple row tiles.
    B2, S2, D2, V2 = 2, 12, 32, 384
    kx2, kw2, kb2 = jax.random.split(jax.random.PRNGKey(1), 3)
    x2 = jax.random.normal(kx2, (B2, S2, D2), dtype=jnp.float32)
    w2 = jax.random.uniform(kw2, (V2, D2), minval=-bound, maxval=bound,
                            dtype=jnp.float32)
    b2 = jax.random.uniform(kb2, (V2,), minval=-bound, maxval=bound,
                            dtype=jnp.float32)
    w2_t, b2_p = prepare_generator_params(w2, b2)
    out2 = jax.block_until_ready(
        generator_forward(x2, w2_t, b2_p, V2, tile_m=16, tile_v=128))
    ref2 = reference_forward(x2, w2, b2)
    assert out2.shape == (B2, S2, V2)
    assert jnp.allclose(out2, ref2, atol=2e-3, rtol=2e-3), \
        float(jnp.max(jnp.abs(out2 - ref2)))

    # Non-aligned M and V -> exercises row padding, -1e30 padded-vocab bias and
    # the output slice path.
    B3, S3, D3, V3 = 1, 7, 32, 130
    kx3, kw3, kb3 = jax.random.split(jax.random.PRNGKey(2), 3)
    x3 = jax.random.normal(kx3, (B3, S3, D3), dtype=jnp.float32)
    w3 = jax.random.uniform(kw3, (V3, D3), minval=-bound, maxval=bound,
                            dtype=jnp.float32)
    b3 = jax.random.uniform(kb3, (V3,), minval=-bound, maxval=bound,
                            dtype=jnp.float32)
    w3_t, b3_p = prepare_generator_params(w3, b3)
    out3 = jax.block_until_ready(
        generator_forward(x3, w3_t, b3_p, V3, tile_m=8, tile_v=128))
    ref3 = reference_forward(x3, w3, b3)
    assert out3.shape == (B3, S3, V3)
    assert jnp.allclose(out3, ref3, atol=2e-3, rtol=2e-3), \
        float(jnp.max(jnp.abs(out3 - ref3)))

    print("KERNEL_OK")
</pallas_src>

<mosaic_0001>
module attributes {stable_mosaic.version = 11 : i64} {
  func.func @generator_kernel(%arg0: i32, %arg1: i32, %arg2: i32, %arg3: memref<16x32xbf16, #tpu.memory_space<vmem>>, %arg4: memref<32x128xbf16, #tpu.memory_space<vmem>>, %arg5: memref<1x128xf32, #tpu.memory_space<vmem>>, %arg6: memref<16x128xf32, #tpu.memory_space<vmem>>, %arg7: memref<16x1xf32, #tpu.memory_space<vmem>>, %arg8: memref<16x1xf32, #tpu.memory_space<vmem>>) attributes {dimension_semantics = [#tpu.dimension_semantics<parallel>, #tpu.dimension_semantics<arbitrary>, #tpu.dimension_semantics<arbitrary>], iteration_bounds = array<i64: 1, 2, 1>, scalar_prefetch = 0 : i64, scratch_operands = 2 : i64, tpu.core_type = #tpu.core_type<tc>, window_params = [{transform_indices = @transform_0, window_bounds = array<i64: 16, 32>}, {transform_indices = @transform_1, window_bounds = array<i64: 32, 128>}, {transform_indices = @transform_2, window_bounds = array<i64: 1, 128>}, {transform_indices = @transform_3, window_bounds = array<i64: 16, 128>}]} {
    %c0 = arith.constant 0 : index
    %c0_0 = arith.constant 0 : index
    %0 = vector.load %arg3[%c0, %c0_0] : memref<16x32xbf16, #tpu.memory_space<vmem>>, vector<16x32xbf16>
    %c0_1 = arith.constant 0 : index
    %c0_2 = arith.constant 0 : index
    %1 = vector.load %arg4[%c0_1, %c0_2] : memref<32x128xbf16, #tpu.memory_space<vmem>>, vector<32x128xbf16>
    %cst = arith.constant dense<0.000000e+00> : vector<16x128xf32>
    %2 = tpu.matmul %0, %1, %cst {dimension_numbers = #tpu.dot_dimension_numbers<[1], [0], [0], [1], [0, 0, 1, 1], [], []>} : vector<16x32xbf16>, vector<32x128xbf16>, vector<16x128xf32> -> vector<16x128xf32>
    %c0_3 = arith.constant 0 : index
    %c0_4 = arith.constant 0 : index
    %3 = vector.load %arg5[%c0_3, %c0_4] : memref<1x128xf32, #tpu.memory_space<vmem>>, vector<1x128xf32>
    %4 = vector.broadcast %3 : vector<1x128xf32> to vector<16x128xf32>
    %5 = arith.addf %2, %4 : vector<16x128xf32>
    %c0_i32 = arith.constant 0 : i32
    %6 = arith.cmpi eq, %arg1, %c0_i32 : i32
    %c0_i32_5 = arith.constant 0 : i32
    %7 = arith.cmpi eq, %arg2, %c0_i32_5 : i32
    %8 = arith.andi %6, %7 : i1
    %9 = arith.extui %8 : i1 to i32
    %c0_i32_6 = arith.constant 0 : i32
    %10 = arith.cmpi ne, %9, %c0_i32_6 : i32
    scf.if %10 {
      %cst_10 = arith.constant -1.000000e+30 : f32
      %17 = vector.broadcast %cst_10 : f32 to vector<16x1xf32>
      %c0_11 = arith.constant 0 : index
      %c0_12 = arith.constant 0 : index
      %18 = vector.load %arg7[%c0_11, %c0_12] : memref<16x1xf32, #tpu.memory_space<vmem>>, vector<16x1xf32>
      tpu.vector_store %arg7[%c0_11, %c0_12], %17 {strides = array<i32>} : memref<16x1xf32, #tpu.memory_space<vmem>>, vector<16x1xf32>,
      %cst_13 = arith.constant 0.000000e+00 : f32
      %19 = vector.broadcast %cst_13 : f32 to vector<16x1xf32>
      %c0_14 = arith.constant 0 : index
      %c0_15 = arith.constant 0 : index
      %20 = vector.load %arg8[%c0_14, %c0_15] : memref<16x1xf32, #tpu.memory_space<vmem>>, vector<16x1xf32>
      tpu.vector_store %arg8[%c0_14, %c0_15], %19 {strides = array<i32>} : memref<16x1xf32, #tpu.memory_space<vmem>>, vector<16x1xf32>,
    } else {
    }
    %c0_i32_7 = arith.constant 0 : i32
    %11 = arith.cmpi eq, %arg1, %c0_i32_7 : i32
    %12 = arith.extui %11 : i1 to i32
    %c0_i32_8 = arith.constant 0 : i32
    %13 = arith.cmpi ne, %12, %c0_i32_8 : i32
    scf.if %13 {
      %c0_10 = arith.constant 0 : index
      %c0_11 = arith.constant 0 : index
      %17 = vector.load %arg7[%c0_10, %c0_11] : memref<16x1xf32, #tpu.memory_space<vmem>>, vector<16x1xf32>
      %cst_12 = arith.constant dense<0xFF800000> : vector<16xf32>
      %18 = vector.multi_reduction <maximumf>, %5, %cst_12 [1] : vector<16x128xf32> to vector<16xf32>
      %19 = vector.shape_cast %18 : vector<16xf32> to vector<16x1xf32>
      %20 = arith.maximumf %17, %19 : vector<16x1xf32>
      %c0_13 = arith.constant 0 : index
      %c0_14 = arith.constant 0 : index
      %21 = vector.load %arg8[%c0_13, %c0_14] : memref<16x1xf32, #tpu.memory_space<vmem>>, vector<16x1xf32>
      %22 = arith.subf %17, %20 : vector<16x1xf32>
      %23 = math.exp %22 : vector<16x1xf32>
      %24 = arith.mulf %21, %23 : vector<16x1xf32>
      %25 = vector.broadcast %20 : vector<16x1xf32> to vector<16x128xf32>
      %26 = arith.subf %5, %25 : vector<16x128xf32>
      %27 = math.exp %26 : vector<16x128xf32>
      %cst_15 = arith.constant dense<0.000000e+00> : vector<16xf32>
      %28 = vector.multi_reduction <add>, %27, %cst_15 [1] : vector<16x128xf32> to vector<16xf32>
      %29 = vector.shape_cast %28 : vector<16xf32> to vector<16x1xf32>
      %30 = arith.addf %24, %29 : vector<16x1xf32>
      %c0_16 = arith.constant 0 : index
      %c0_17 = arith.constant 0 : index
      %31 = vector.load %arg8[%c0_16, %c0_17] : memref<16x1xf32, #tpu.memory_space<vmem>>, vector<16x1xf32>
      tpu.vector_store %arg8[%c0_16, %c0_17], %30 {strides = array<i32>} : memref<16x1xf32, #tpu.memory_space<vmem>>, vector<16x1xf32>,
      %c0_18 = arith.constant 0 : index
      %c0_19 = arith.constant 0 : index
      %32 = vector.load %arg7[%c0_18, %c0_19] : memref<16x1xf32, #tpu.memory_space<vmem>>, vector<16x1xf32>
      tpu.vector_store %arg7[%c0_18, %c0_19], %20 {strides = array<i32>} : memref<16x1xf32, #tpu.memory_space<vmem>>, vector<16x1xf32>,
    } else {
    }
    %c1_i32 = arith.constant 1 : i32
    %14 = arith.cmpi eq, %arg1, %c1_i32 : i32
    %15 = arith.extui %14 : i1 to i32
    %c0_i32_9 = arith.constant 0 : i32
    %16 = arith.cmpi ne, %15, %c0_i32_9 : i32
    scf.if %16 {
      %c0_10 = arith.constant 0 : index
      %c0_11 = arith.constant 0 : index
      %17 = vector.load %arg7[%c0_10, %c0_11] : memref<16x1xf32, #tpu.memory_space<vmem>>, vector<16x1xf32>
      %c0_12 = arith.constant 0 : index
      %c0_13 = arith.constant 0 : index
      %18 = vector.load %arg8[%c0_12, %c0_13] : memref<16x1xf32, #tpu.memory_space<vmem>>, vector<16x1xf32>
      %19 = math.log %18 : vector<16x1xf32>
      %20 = arith.addf %17, %19 : vector<16x1xf32>
      %21 = vector.broadcast %20 : vector<16x1xf32> to vector<16x128xf32>
      %22 = arith.subf %5, %21 : vector<16x128xf32>
      %c0_14 = arith.constant 0 : index
      %c0_15 = arith.constant 0 : index
      %23 = vector.load %arg6[%c0_14, %c0_15] : memref<16x128xf32, #tpu.memory_space<vmem>>, vector<16x128xf32>
      tpu.vector_store %arg6[%c0_14, %c0_15], %22 {strides = array<i32>} : memref<16x128xf32, #tpu.memory_space<vmem>>, vector<16x128xf32>,
    } else {
    }
    return
  }
  func.func @transform_0(%arg0: i32, %arg1: i32, %arg2: i32) -> (i32, i32) {
    %c0_i32 = arith.constant 0 : i32
    %c0_i32_0 = arith.constant 0 : i32
    return %arg0, %c0_i32 : i32, i32
  }
  func.func @transform_1(%arg0: i32, %arg1: i32, %arg2: i32) -> (i32, i32) {
    %c0_i32 = arith.constant 0 : i32
    %c0_i32_0 = arith.constant 0 : i32
    return %c0_i32, %arg2 : i32, i32
  }
  func.func @transform_2(%arg0: i32, %arg1: i32, %arg2: i32) -> (i32, i32) {
    %c0_i32 = arith.constant 0 : i32
    %c0_i32_0 = arith.constant 0 : i32
    return %c0_i32, %arg2 : i32, i32
  }
  func.func @transform_3(%arg0: i32, %arg1: i32, %arg2: i32) -> (i32, i32) {
    %0 = arith.muli %arg2, %arg1 : i32
    %c0_i32 = arith.constant 0 : i32
    return %arg0, %0 : i32, i32
  }
}

</mosaic_0001>

<bundles_post_ra>
// kernel: _generator_call.1
= control target key start
LH: loop header
LB: loop body
LE: loop exit
PB: predicated region body
PF: predicated region fallthrough
CT: control target
= control target key end

     0   :  { %8 = vsyncpa [#allocation5], 0  ;;  %s774_s0 = inlined_call_operand.vmem [shape: bf16[16,32], index: 0, kind: input, shape index: {}]   ;;  %s775_s1 = inlined_call_operand.vmem [shape: bf16[32,128], index: 1, kind: input, shape index: {}]   ;;  %s776_s2 = inlined_call_operand.vmem [shape: f32[1,128], index: 2, kind: input, shape index: {}]   ;;  %s777_s3 = inlined_call_operand.hbm [shape: f32[16,128], index: 3, kind: output, shape index: {}]  }
   0x1   :  { %10 = vsyncpa [#allocation5 + $0x1], 0  ;;  %s687_s12 = smov 0   ;;  %s689_s13 = smov 0  }
   0x2   :  { %s691_s14 = smov 0  }
   0x3 LB: > { %s511_s15 = sadd.s32 4294967295, %s656_s14   ;;  %s512_s16 = sadd.s32 4294967294, %s656_s14   ;;  %s656_s14 = sphi %s691_s14, %s16_s14   ;;  %s652_s13 = sphi %s689_s13, %s780_s13   ;;  %s648_s12 = sphi %s687_s12, %s779_s12  }
   0x4   : > { %s31_s17 = sadd.s32 1, %s652_s13  ;;  %p517_p0 = scmp.ge.s32.totalorder %s656_s14, 1 }
   0x5   : > { %p33_p1 = scmp.ge.s32.totalorder %s31_s17, 2  ;;  %p181_p2 = scmp.lt.s32.totalorder %s656_s14, 3 }
   0x7   : > { %s782_s17 = smov (%p33_p1, %s31_s17), 0  ;;  %p182_p3 = pnand %p517_p0, %p181_p2 }
   0x8   : > { %v586_v0 = vld [vmem:[%s775_s1] sm:$0xff] (!%p182_p3)   ;;  %v658_v1 = vmov (!%p182_p3), 0.0   ;;  %v587_v2 = vld [vmem:[%s775_s1 + $0x8] sm:$0xff] (!%p182_p3)   ;;  %vm659_vm0 = vmmov (!%p182_p3), 0   ;;  %vm258_vm1 = vcmask (!%p182_p3), 261120   ;;  %p303_p4 = scmp.eq.s32.totalorder (!%p182_p3), %s648_s12, 0 }
   0x9   : > { %185 = sbr.rel (%p182_p3) target bundleno = 846 (0x34e), region = 32  ;;  %534 = vmatprep.subr.bf16.mxu0 (!%p182_p3), %v658_v1  ;;  %538 = vmatprep.mubr.msk.bf16.mxu0 (!%p182_p3), %vm659_vm0, %v658_v1  ;;  %v588_v3 = vld [vmem:[%s774_s0] sm:$0xff] (!%p182_p3)  }
   0xa   : > { %535 = vmatpush3.bf16.msra.mxu0 (!%p182_p3), %v586_v0  ;;  %v518_v4 = vld [vmem:[%s776_s2] ss:$0 sm:$0xff] (!%p182_p3) }
   0xb   : > { %536 = vmatprep.subr.bf16.mxu0 (!%p182_p3), %v658_v1 }
   0xe   : > { %537 = vmatpush3.bf16.msra.mxu0 (!%p182_p3), %v587_v2 }
  0x10   : > { %vm309_vm2 = vcmask (%p303_p4), 7168   ;;  %v660_v11 = vmov (%p303_p4), -1e+30   ;;  %v661_v12 = vmov (%p303_p4), 0.0  }
  0x11   : > { %539 = vmatmul.mubr.msk.bf16.vlgmr.msra.gmra.mrb[0].mxu0 %vm258_vm1, %v588_v3  ;;  %310 = vst.msk [vmem:[#allocation2] sm:$0xff] (%p303_p4), %vm309_vm2, %v660_v11  ;;  %311 = vst.msk [vmem:[#allocation2 + $0x8] sm:$0xff] (%p303_p4), %vm309_vm2, %v660_v11 }
  0x12   : > { %312 = vst.msk [vmem:[#allocation3] sm:$0xff] (%p303_p4), %vm309_vm2, %v661_v12  ;;  %313 = vst.msk [vmem:[#allocation3 + $0x8] sm:$0xff] (%p303_p4), %vm309_vm2, %v661_v12 }
  0xe1   : > { %308 = sbr.rel (!%p303_p4) target bundleno = 232 (0xe8), region = 36 }
  0xe4   : > { %v296_v5 = vpop.f32.mrb[0].mxu0 }
  0xe5   : > { %v722_v6 = vadd.f32 %v518_v4, %v296_v5  ;;  %v540_v7 = vpop.f32.mrb[1].mxu0 }
  0xe6   : > { %v299_v8 = vpop.f32.mrb[2].mxu0 }
  0xe7   : > { %v724_v9 = vadd.f32 %v518_v4, %v299_v8  ;;  %v541_v10 = vpop.f32.mrb[3].mxu0 }
  0xe8 PF: > { %p524_p5 = scmp.ne.s32.totalorder %s648_s12, 0 }
  0xe9   : > { %319 = vmax.xlane.f32.xlu0 (!%p524_p5), %v722_v6  ;;  %v662_v13 = vmov (!%p524_p5), 0   ;;  %v317_v14 = vld [vmem:[#allocation2] sm:$0xff] (!%p524_p5)  ;;  %vm357_vm3 = vcmask (!%p524_p5), 7168   ;;  %v318_v17 = vld [vmem:[#allocation2 + $0x8] sm:$0xff] (!%p524_p5)  ;;  %v325_v33 = vld [vmem:[#allocation3] sm:$0xff] (!%p524_p5) }
  0xea   : > { %316 = sbr.rel (%p524_p5) target bundleno = 669 (0x29d), region = 40  ;;  %589 = vset.pattern.permute.xlu1 (!%p524_p5), %v662_v13  ;;  %590 = vset.pattern.permute.xlu0 (!%p524_p5), %v662_v13  ;;  %v326_v37 = vld [vmem:[#allocation3 + $0x8] sm:$0xff] (!%p524_p5) }
  0xed   : > { %321 = vmax.xlane.f32.xlu0 (!%p524_p5), %v724_v9 }
 0x176   : > { %v320_v15 = vpop.xlane.xlu0 %319 }
 0x177   : > { %v323_v16 = vmax.f32 %v317_v14, %v320_v15 }
 0x179   : > { %v327_v18 = vsub.f32 %v317_v14, %v323_v16  ;;  %360 = vst.msk [vmem:[#allocation2] sm:$0xff] %vm357_vm3, %v323_v16  ;;  %337 = vperm.xlu1 %589, %v323_v16  }
 0x17a   : > { %v322_v19 = vpop.xlane.xlu0 %321 }
 0x17b   : > { %v324_v20 = vmax.f32 %v318_v17, %v322_v19  ;;  %v329_v30 = vmul.f32 1.442695, %v327_v18 }
 0x17d   : > { %v328_v21 = vsub.f32 %v318_v17, %v324_v20  ;;  %361 = vst.msk [vmem:[#allocation2 + $0x8] sm:$0xff] %vm357_vm3, %v324_v20  ;;  %342 = vperm.xlu1 %589, %v324_v20  }
 0x17f   : > { %v331_v31 = vmul.f32 1.442695, %v328_v21 }
 0x1f8   : > { %v338_v22 = vpop.permute.xlu1 %337 }
 0x1f9   : > { %v345_v23 = vsub.f32 %v722_v6, %v338_v22 }
 0x1fb   : > { %v347_v24 = vmul.f32 1.442695, %v345_v23 }
 0x1fc   : > { %v343_v25 = vpop.permute.xlu1 %342 }
 0x1fd   : > { %591 = vpow2.f32 %v347_v24  ;;  %v346_v26 = vsub.f32 %v724_v9, %v343_v25 }
 0x1ff   : > { %v349_v27 = vmul.f32 1.442695, %v346_v26 }
 0x201   : > { %593 = vpow2.f32 %v349_v27 }
 0x202   : > { %595 = vpow2.f32 %v329_v30 }
 0x203   : > { %597 = vpow2.f32 %v331_v31 }
 0x207   : > { %v592_v28 = vpop.eup %591 }
 0x208   : > { %351 = vadd.xlane.f32.xlu0 %v592_v28 }
 0x20b   : > { %v594_v29 = vpop.eup %593 }
 0x20c   : > { %353 = vadd.xlane.f32.xlu1 %v594_v29  ;;  %v596_v32 = vpop.eup %595 }
 0x20d   : > { %v333_v34 = vmul.f32 %v596_v32, %v325_v33  ;;  %v598_v35 = vpop.eup %597 }
 0x20e   : > { %v334_v39 = vmul.f32 %v598_v35, %v326_v37 }
 0x295   : > { %v352_v36 = vpop.xlane.xlu0 %351 }
 0x296   : > { %v355_v38 = vadd.f32 %v352_v36, %v333_v34 }
 0x298   : > { %358 = vst.msk [vmem:[#allocation3] sm:$0xff] %vm357_vm3, %v355_v38 }
 0x299   : > { %v354_v40 = vpop.xlane.xlu1 %353 }
 0x29a   : > { %v356_v41 = vadd.f32 %v354_v40, %v334_v39 }
 0x29c   : > { %359 = vst.msk [vmem:[#allocation3 + $0x8] sm:$0xff] %vm357_vm3, %v356_v41 }
 0x29d PF: > { %p525_p6 = scmp.ne.s32.totalorder %s648_s12, 1 }
 0x29e   : > { %v663_v43 = vmov (!%p525_p6), 0   ;;  %v366_v46 = vld [vmem:[#allocation2] sm:$0xff] (!%p525_p6)  ;;  %v367_v49 = vld [vmem:[#allocation2 + $0x8] sm:$0xff] (!%p525_p6) }
 0x29f   : > { %365 = sbr.rel (%p525_p6) target bundleno = 822 (0x336), region = 44  ;;  %v368_v42 = vld [vmem:[#allocation3] sm:$0xff] (!%p525_p6)  ;;  %599 = vset.pattern.permute.xlu0 (!%p525_p6), %v663_v43 }
 0x2a0   : > { %600 = vlog2.f32 (!%p525_p6), %v368_v42 }
 0x2a3   : > { %v369_v44 = vld [vmem:[#allocation3 + $0x8] sm:$0xff] (!%p525_p6) }
 0x2a4   : > { %602 = vlog2.f32 (!%p525_p6), %v369_v44 }
 0x2aa   : > { %v601_v45 = vpop.eup %600 }
 0x2ab   : > { %v371_v48 = vmul.f32 0.6931472, %v601_v45 }
 0x2ad   : > { %v374_v51 = vadd.f32 %v371_v48, %v366_v46 }
 0x2ae   : > { %v603_v47 = vpop.eup %602 }
 0x2af   : > { %v373_v50 = vmul.f32 0.6931472, %v603_v47  ;;  %378 = vperm.xlu0 %599, %v374_v51  }
 0x2b1   : > { %v375_v52 = vadd.f32 %v373_v50, %v367_v49 }
 0x2b3   : > { %383 = vperm.xlu0 %599, %v375_v52  }
 0x32e   : > { %v379_v53 = vpop.permute.xlu0 %378 }
 0x32f   : > { %v386_v54 = vsub.f32 %v722_v6, %v379_v53 }
 0x331   : > { %388 = vst [vmem:[#allocation4] sm:$0xff] %v386_v54 }
 0x332   : > { %v384_v55 = vpop.permute.xlu0 %383 }
 0x333   : > { %v387_v56 = vsub.f32 %v724_v9, %v384_v55 }
 0x335   : > { %389 = vst [vmem:[#allocation4 + $0x8] sm:$0xff] %v387_v56 }
 0x336 PF: > { %p740_p7 = scmp.eq.s32.totalorder %s511_s15, 1  ;;  %s664_s27 = smov [#allocation4]  }
 0x337   : > { %s406_s28 = sshll.u32 %s664_s27, 4  ;;  %s407_s28 = int_to_ptr.vmem [resolvable:$true] %s406_s28 }
 0x338   : > { %s604_s29 = scalar_lea.vmem %s407_s28, 256  ;;  %s610_s30 = scalar_lea.vmem %s407_s28, 512 }
 0x339   : > { %p605_p8 = scmp.ne.s32.totalorder %s407_s28, %s604_s29  ;;  %p611_p11 = scmp.lt.s32.totalorder %s407_s28, %s407_s28 }
 0x33a   : > { %p612_p12 = scmp.lt.s32.totalorder %s610_s30, %s604_s29 }
 0x33b   : > { %p606_p9 = pnand %p605_p8, %p740_p7 }
 0x33c   : > { %p613_p13 = por %p612_p12, %p611_p11 }
 0x33d   : > { %p607_p10 = pneg %p606_p9 }
 0x33f   : > { %p614_p0 = pnand %p613_p13, %p607_p10 }
 0x341   : > { %617 = shalt.err (!%p614_p0)
}
 0x342   : > { %s618_s6 = scalar_lea.hbm %s777_s3, 256 }
 0x343   : > { %p619_p1 = scmp.ne.s32.totalorder %s777_s3, %s618_s6  ;;  %p624_p4 = scmp.lt.u32.totalorder %s618_s6, %s777_s3 }
 0x345   : > { %p620_p2 = pnand %p619_p1, %p740_p7 }
 0x347   : > { %p621_p3 = pneg %p620_p2 }
 0x349   : > { %p626_p5 = pnand %p624_p4, %p621_p3 }
 0x34b   : > { %629 = shalt.err (!%p626_p5)
}
 0x34c   : > { %s665_s11 = smov 128   ;;  %s666_s12 = smov 8  }
 0x34d   : > { %543 = dma.vmem_to_hbm [thread:$0]  (%p740_p7), %s407_s28, 256, %s777_s3, [#allocation5], %s665_s11, %s665_s11, %s666_s12  }
 0x34e PF: > { %p551_p6 = scmp.ge.s32.totalorder %s656_s14, 2  ;;  %p552_p8 = scmp.eq.s32.totalorder %s512_s16, 1 }
 0x350   : > { %p547_p9 = pnand %p552_p8, %p551_p6 }
 0x352   : > { %643 = dma.done.wait (!%p547_p9), [#allocation5], 256  }
 0x353   : > { %645 = vsyncadd (!%p547_p9), [#allocation5], 4294967040  ;;  %s16_s14 = sadd.s32 1, %s656_s14   ;;  %s779_s12 = smov %s652_s13 }
 0x354   : > { %p13_p10 = scmp.ge.s32.totalorder %s16_s14, 4   ;;  %s780_s13 = smov %s782_s17 }
 0x356   :  { %15 = sbr.rel (!%p13_p10) target bundleno = 3 (0x3), region = 85 }
 0x35d   :  { %427 = vsyncpa [#allocation5], 1 }
 0x35e   :  { %429 = vsyncpa [#allocation5 + $0x1], 1 }

</bundles_post_ra>
